<compile_context>
chip_gen: v7x
topology: tpu7x:2x2x1
jax: 0.10.0
libtpu: 0.0.40
codegen_flags: <defaults>
</compile_context>

<pallas_src>
import functools

import jax
import jax.numpy as jnp
from jax.experimental import pallas as pl
from jax.experimental.pallas import tpu as pltpu


DEFAULT_MAX_BLOCK_BYTES = 4 * 1024 * 1024   # per x block; ~16 MiB total with
                                            # double-buffered input + output
VMEM_LIMIT_BYTES = 32 * 1024 * 1024         # safe on v5e/v6e (128 MiB) and v7x (64 MiB)


# --------------------------------------------------------------------------- #
# tile selection
# --------------------------------------------------------------------------- #
def _select_tiles(B, L, C, max_block_elems):
    """Pick (TB, TL).  TL == L means the whole sequence fits in one block
    (fused single-pass norm).  Tiles respect the TPU (8, 128) block constraint
    for the (TB, C) stat blocks: TB is either == B or a multiple of 8; TL is
    either == L or a multiple of 8."""
    per_b = L * C
    if per_b <= max_block_elems:
        tb_max = max(1, max_block_elems // per_b)
        if B <= tb_max:
            return B, L
        if tb_max >= 8:
            return (tb_max // 8) * 8, L
    # L-tiled path
    tb = B if B < 8 else 8
    tl = max(8, (max_block_elems // max(1, tb * C)) // 8 * 8)
    tl = min(tl, L)
    return tb, tl


# --------------------------------------------------------------------------- #
# kernels
# --------------------------------------------------------------------------- #
def _revin_norm_kernel(x_ref, w_ref, b_ref, y_ref, mean_ref, std_ref, *, eps, affine):
    # Fused single-pass path.  x_ref/y_ref: (TB, L, C); w_ref/b_ref: (1, 1, C)
    # float32; mean_ref/std_ref: (TB, C) float32.
    x = x_ref[...].astype(jnp.float32)
    mean = jnp.mean(x, axis=1)                              # (TB, C)
    xc = x - mean[:, None, :]
    var = jnp.mean(xc * xc, axis=1)                         # biased variance
    std = jnp.sqrt(var + eps)                               # (TB, C)
    inv_std = pl.reciprocal(std, approx=False)              # one divide per (b, c)
    y = xc * inv_std[:, None, :]
    if affine:
        y = y * w_ref[...] + b_ref[...]
    y_ref[...] = y.astype(y_ref.dtype)
    mean_ref[...] = mean
    std_ref[...] = std


def _revin_stats_kernel(x_ref, mean_ref, std_ref, sum_acc, sq_acc, *,
                        eps, seq_len, l_tile):
    # L-tiled statistics pass.  x_ref: (TB, TL, C); outputs: (TB, C) f32;
    # scratch accumulators: (TB, C) f32.  Grid = (nb, nl), L axis "arbitrary".
    k = pl.program_id(1)

    @pl.when(k == 0)
    def _():
        sum_acc[...] = jnp.zeros_like(sum_acc)
        sq_acc[...] = jnp.zeros_like(sq_acc)

    x = x_ref[...].astype(jnp.float32)
    if seq_len % l_tile != 0:  # mask the padded tail tile (static check)
        l_idx = jax.lax.broadcasted_iota(jnp.int32, x.shape, 1) + k * l_tile
        x = jnp.where(l_idx < seq_len, x, 0.0)
    sum_acc[...] += jnp.sum(x, axis=1)
    sq_acc[...] += jnp.sum(x * x, axis=1)

    @pl.when(k == pl.num_programs(1) - 1)
    def _():
        inv_n = 1.0 / seq_len
        mean = sum_acc[...] * inv_n
        var = jnp.maximum(sq_acc[...] * inv_n - mean * mean, 0.0)
        mean_ref[...] = mean
        std_ref[...] = jnp.sqrt(var + eps)


def _revin_apply_kernel(x_ref, w_ref, b_ref, mean_ref, std_ref, y_ref, *, affine):
    # Normalization pass for the L-tiled path.  x_ref/y_ref: (TB, TL, C);
    # w_ref/b_ref: (1, 1, C) f32; mean_ref/std_ref: (TB, C) f32.
    x = x_ref[...].astype(jnp.float32)
    inv_std = pl.reciprocal(std_ref[...], approx=False)
    y = (x - mean_ref[...][:, None, :]) * inv_std[:, None, :]
    if affine:
        y = y * w_ref[...] + b_ref[...]
    y_ref[...] = y.astype(y_ref.dtype)


def _revin_denorm_kernel(x_ref, inv_w_ref, b_ref, mean_ref, std_ref, y_ref, *, affine):
    # x_ref/y_ref: (TB, TL, C); inv_w_ref/b_ref: (1, 1, C) f32 (inv_w is
    # 1/(w + eps^2) precomputed in the wrapper); mean_ref/std_ref: (TB, C) f32.
    x = x_ref[...].astype(jnp.float32)
    if affine:
        x = (x - b_ref[...]) * inv_w_ref[...]
    x = x * std_ref[...][:, None, :] + mean_ref[...][:, None, :]
    y_ref[...] = x.astype(y_ref.dtype)


# --------------------------------------------------------------------------- #
# functional wrappers
# --------------------------------------------------------------------------- #
def revin_norm(x, weight, bias, *, eps=1e-5, affine=True,
               max_block_bytes=DEFAULT_MAX_BLOCK_BYTES):
    """mode='norm': returns (y, mean, stdev) with mean/stdev shaped (B, 1, C)."""
    B, L, C = x.shape
    max_elems = max(1, max_block_bytes // x.dtype.itemsize)
    TB, TL = _select_tiles(B, L, C, max_elems)
    nb = pl.cdiv(B, TB)

    w32 = jnp.asarray(weight, jnp.float32).reshape(1, 1, C)
    b32 = jnp.asarray(bias, jnp.float32).reshape(1, 1, C)

    if TL == L:
        # Fused single-pass: whole (TB, L, C) slab fits the VMEM budget.
        kernel = functools.partial(_revin_norm_kernel, eps=float(eps), affine=affine)
        y, mean, std = pl.pallas_call(
            kernel,
            grid=(nb,),
            in_specs=[
                pl.BlockSpec((TB, L, C), lambda b: (b, 0, 0)),
                pl.BlockSpec((1, 1, C), lambda b: (0, 0, 0)),
                pl.BlockSpec((1, 1, C), lambda b: (0, 0, 0)),
            ],
            out_specs=[
                pl.BlockSpec((TB, L, C), lambda b: (b, 0, 0)),
                pl.BlockSpec((TB, C), lambda b: (b, 0)),
                pl.BlockSpec((TB, C), lambda b: (b, 0)),
            ],
            out_shape=[
                jax.ShapeDtypeStruct((B, L, C), x.dtype),
                jax.ShapeDtypeStruct((B, C), jnp.float32),
                jax.ShapeDtypeStruct((B, C), jnp.float32),
            ],
            compiler_params=pltpu.CompilerParams(
                dimension_semantics=("parallel",),
                vmem_limit_bytes=VMEM_LIMIT_BYTES,
            ),
            cost_estimate=pl.CostEstimate(
                flops=8 * B * L * C,
                transcendentals=B * C,
                bytes_accessed=2 * B * L * C * x.dtype.itemsize + 8 * B * C,
            ),
        )(x, w32, b32)
    else:
        # L-tiled two-pass path for large L*C (keeps blocks small enough for
        # v7x's 64 MiB VMEM while staying double-buffered).
        nl = pl.cdiv(L, TL)
        stats_kernel = functools.partial(
            _revin_stats_kernel, eps=float(eps), seq_len=L, l_tile=TL)
        mean, std = pl.pallas_call(
            stats_kernel,
            grid=(nb, nl),
            in_specs=[pl.BlockSpec((TB, TL, C), lambda b, k: (b, k, 0))],
            out_specs=[
                pl.BlockSpec((TB, C), lambda b, k: (b, 0)),
                pl.BlockSpec((TB, C), lambda b, k: (b, 0)),
            ],
            out_shape=[
                jax.ShapeDtypeStruct((B, C), jnp.float32),
                jax.ShapeDtypeStruct((B, C), jnp.float32),
            ],
            scratch_shapes=[
                pltpu.VMEM((TB, C), jnp.float32),
                pltpu.VMEM((TB, C), jnp.float32),
            ],
            compiler_params=pltpu.CompilerParams(
                dimension_semantics=("parallel", "arbitrary"),
                vmem_limit_bytes=VMEM_LIMIT_BYTES,
            ),
        )(x)

        apply_kernel = functools.partial(_revin_apply_kernel, affine=affine)
        y = pl.pallas_call(
            apply_kernel,
            grid=(nb, nl),
            in_specs=[
                pl.BlockSpec((TB, TL, C), lambda b, k: (b, k, 0)),
                pl.BlockSpec((1, 1, C), lambda b, k: (0, 0, 0)),
                pl.BlockSpec((1, 1, C), lambda b, k: (0, 0, 0)),
                pl.BlockSpec((TB, C), lambda b, k: (b, 0)),
                pl.BlockSpec((TB, C), lambda b, k: (b, 0)),
            ],
            out_specs=pl.BlockSpec((TB, TL, C), lambda b, k: (b, k, 0)),
            out_shape=jax.ShapeDtypeStruct((B, L, C), x.dtype),
            compiler_params=pltpu.CompilerParams(
                dimension_semantics=("parallel", "parallel"),
                vmem_limit_bytes=VMEM_LIMIT_BYTES,
            ),
        )(x, w32, b32, mean, std)

    return y, mean.reshape(B, 1, C), std.reshape(B, 1, C)


def revin_denorm(x, mean, stdev, weight, bias, *, eps=1e-5, affine=True,
                 max_block_bytes=DEFAULT_MAX_BLOCK_BYTES):
    """mode='denorm': inverts the normalization given (B,1,C) (or (B,C)) stats."""
    B, L, C = x.shape
    max_elems = max(1, max_block_bytes // x.dtype.itemsize)
    TB, TL = _select_tiles(B, L, C, max_elems)
    nb = pl.cdiv(B, TB)
    nl = pl.cdiv(L, TL)

    mean2 = jnp.asarray(mean, jnp.float32).reshape(B, C)
    std2 = jnp.asarray(stdev, jnp.float32).reshape(B, C)
    b32 = jnp.asarray(bias, jnp.float32).reshape(1, 1, C)
    # hoisted: the per-element divide becomes a multiply inside the kernel
    inv_w32 = (1.0 / (jnp.asarray(weight, jnp.float32) + eps * eps)).reshape(1, 1, C)

    kernel = functools.partial(_revin_denorm_kernel, affine=affine)
    return pl.pallas_call(
        kernel,
        grid=(nb, nl),
        in_specs=[
            pl.BlockSpec((TB, TL, C), lambda b, k: (b, k, 0)),
            pl.BlockSpec((1, 1, C), lambda b, k: (0, 0, 0)),
            pl.BlockSpec((1, 1, C), lambda b, k: (0, 0, 0)),
            pl.BlockSpec((TB, C), lambda b, k: (b, 0)),
            pl.BlockSpec((TB, C), lambda b, k: (b, 0)),
        ],
        out_specs=pl.BlockSpec((TB, TL, C), lambda b, k: (b, k, 0)),
        out_shape=jax.ShapeDtypeStruct((B, L, C), x.dtype),
        compiler_params=pltpu.CompilerParams(
            dimension_semantics=("parallel", "parallel"),
            vmem_limit_bytes=VMEM_LIMIT_BYTES,
        ),
        cost_estimate=pl.CostEstimate(
            flops=4 * B * L * C,
            transcendentals=0,
            bytes_accessed=2 * B * L * C * x.dtype.itemsize + 8 * B * C,
        ),
    )(x, inv_w32, b32, mean2, std2)


# --------------------------------------------------------------------------- #
# module-like wrapper (mirrors the stateful PyTorch interface)
# --------------------------------------------------------------------------- #
class RevINPallas:
    """Pallas port of RevIN.  mode='norm' stores mean/stdev on the object to
    mirror the PyTorch module; prefer the functional revin_norm / revin_denorm
    when composing with jax.jit / vmap / scan (no Python-side state)."""

    def __init__(self, num_features: int, eps: float = 1e-5, affine: bool = True):
        self.num_features = num_features
        self.eps = float(eps)
        self.affine = affine
        self.affine_weight = jnp.ones((num_features,), jnp.float32)
        self.affine_bias = jnp.zeros((num_features,), jnp.float32)
        self.mean = None
        self.stdev = None

    def __call__(self, x, mode: str):
        if mode == "norm":
            y, self.mean, self.stdev = revin_norm(
                x, self.affine_weight, self.affine_bias,
                eps=self.eps, affine=self.affine)
            return y
        elif mode == "denorm":
            assert self.mean is not None and self.stdev is not None, (
                "must call mode='norm' before mode='denorm'")
            return revin_denorm(
                x, self.mean, self.stdev, self.affine_weight, self.affine_bias,
                eps=self.eps, affine=self.affine)
        else:
            raise NotImplementedError(mode)


# --------------------------------------------------------------------------- #
# self-test
# --------------------------------------------------------------------------- #
def _reference_norm(x, w, b, eps):
    mean = jnp.mean(x, axis=1, keepdims=True)
    std = jnp.sqrt(jnp.var(x, axis=1, keepdims=True) + eps)
    return ((x - mean) / std) * w + b, mean, std


if __name__ == "__main__":
    key = jax.random.PRNGKey(0)
    B, L, C = 2, 16, 8  # batch, seq len, num_features
    x = jax.random.normal(key, (B, L, C), dtype=jnp.float32) * 3.0 + 1.5

    revin = RevINPallas(num_features=C, eps=1e-5, affine=True)

    # ---- fused single-pass path (default) --------------------------------
    y = jax.block_until_ready(revin(x, "norm"))
    y_ref, mean_ref, std_ref = _reference_norm(
        x, revin.affine_weight, revin.affine_bias, revin.eps)
    assert jnp.allclose(y, y_ref, atol=1e-4, rtol=1e-4)
    assert jnp.allclose(revin.mean, mean_ref, atol=1e-5, rtol=1e-5)
    assert jnp.allclose(revin.stdev, std_ref, atol=1e-5, rtol=1e-5)

    x_rec = jax.block_until_ready(revin(y, "denorm"))
    assert jnp.allclose(x_rec, x, atol=1e-3, rtol=1e-3)

    # ---- exercise the L-tiled two-pass path with a tiny VMEM budget -------
    tiny = 8 * C * 4  # forces TL = 8 < L -> sum/sumsq accumulation path
    y2, m2, s2 = revin_norm(x, revin.affine_weight, revin.affine_bias,
                            eps=revin.eps, affine=True, max_block_bytes=tiny)
    y2 = jax.block_until_ready(y2)
    assert jnp.allclose(y2, y_ref, atol=1e-4, rtol=1e-4)
    assert jnp.allclose(m2, mean_ref, atol=1e-5, rtol=1e-5)
    assert jnp.allclose(s2, std_ref, atol=1e-4, rtol=1e-4)

    x_rec2 = jax.block_until_ready(
        revin_denorm(y2, m2, s2, revin.affine_weight, revin.affine_bias,
                     eps=revin.eps, affine=True, max_block_bytes=tiny))
    assert jnp.allclose(x_rec2, x, atol=1e-3, rtol=1e-3)

    print("KERNEL_OK")
</pallas_src>

<mosaic_0001>
module attributes {stable_mosaic.version = 11 : i64} {
  func.func @_revin_norm_kernel(%arg0: i32, %arg1: memref<2x16x8xf32, #tpu.memory_space<vmem>>, %arg2: memref<1x1x8xf32, #tpu.memory_space<vmem>>, %arg3: memref<1x1x8xf32, #tpu.memory_space<vmem>>, %arg4: memref<2x16x8xf32, #tpu.memory_space<vmem>>, %arg5: memref<2x8xf32, #tpu.memory_space<vmem>>, %arg6: memref<2x8xf32, #tpu.memory_space<vmem>>) attributes {dimension_semantics = [#tpu.dimension_semantics<parallel>], iteration_bounds = array<i64: 1>, scalar_prefetch = 0 : i64, scratch_operands = 0 : i64, tpu.core_type = #tpu.core_type<tc>, window_params = [{transform_indices = @transform_0, window_bounds = array<i64: 2, 16, 8>}, {pipeline_mode = #tpu.pipeline_mode<synchronous>, transform_indices = @transform_1, window_bounds = array<i64: 1, 1, 8>}, {pipeline_mode = #tpu.pipeline_mode<synchronous>, transform_indices = @transform_2, window_bounds = array<i64: 1, 1, 8>}, {transform_indices = @transform_3, window_bounds = array<i64: 2, 16, 8>}, {transform_indices = @transform_4, window_bounds = array<i64: 2, 8>}, {transform_indices = @transform_5, window_bounds = array<i64: 2, 8>}]} {
    %c0 = arith.constant 0 : index
    %c0_0 = arith.constant 0 : index
    %c0_1 = arith.constant 0 : index
    %0 = vector.load %arg1[%c0, %c0_0, %c0_1] : memref<2x16x8xf32, #tpu.memory_space<vmem>>, vector<2x16x8xf32>
    %cst = arith.constant dense<0.000000e+00> : vector<2x8xf32>
    %1 = vector.multi_reduction <add>, %0, %cst [1] : vector<2x16x8xf32> to vector<2x8xf32>
    %cst_2 = arith.constant 1.600000e+01 : f32
    %2 = vector.broadcast %cst_2 : f32 to vector<2x8xf32>
    %3 = arith.divf %1, %2 : vector<2x8xf32>
    %4 = vector.shape_cast %3 : vector<2x8xf32> to vector<2x1x8xf32>
    %5 = vector.broadcast %4 : vector<2x1x8xf32> to vector<2x16x8xf32>
    %6 = arith.subf %0, %5 : vector<2x16x8xf32>
    %7 = arith.mulf %6, %6 : vector<2x16x8xf32>
    %cst_3 = arith.constant dense<0.000000e+00> : vector<2x8xf32>
    %8 = vector.multi_reduction <add>, %7, %cst_3 [1] : vector<2x16x8xf32> to vector<2x8xf32>
    %cst_4 = arith.constant 1.600000e+01 : f32
    %9 = vector.broadcast %cst_4 : f32 to vector<2x8xf32>
    %10 = arith.divf %8, %9 : vector<2x8xf32>
    %cst_5 = arith.constant 9.99999974E-6 : f32
    %11 = vector.broadcast %cst_5 : f32 to vector<2x8xf32>
    %12 = arith.addf %10, %11 : vector<2x8xf32>
    %13 = math.sqrt %12 : vector<2x8xf32>
    %14 = tpu.reciprocal %13 : vector<2x8xf32> -> vector<2x8xf32>
    %15 = vector.shape_cast %14 : vector<2x8xf32> to vector<2x1x8xf32>
    %16 = vector.broadcast %15 : vector<2x1x8xf32> to vector<2x16x8xf32>
    %17 = arith.mulf %6, %16 : vector<2x16x8xf32>
    %c0_6 = arith.constant 0 : index
    %c0_7 = arith.constant 0 : index
    %c0_8 = arith.constant 0 : index
    %18 = vector.load %arg2[%c0_6, %c0_7, %c0_8] : memref<1x1x8xf32, #tpu.memory_space<vmem>>, vector<1x1x8xf32>
    %19 = vector.broadcast %18 : vector<1x1x8xf32> to vector<2x16x8xf32>
    %20 = arith.mulf %17, %19 : vector<2x16x8xf32>
    %c0_9 = arith.constant 0 : index
    %c0_10 = arith.constant 0 : index
    %c0_11 = arith.constant 0 : index
    %21 = vector.load %arg3[%c0_9, %c0_10, %c0_11] : memref<1x1x8xf32, #tpu.memory_space<vmem>>, vector<1x1x8xf32>
    %22 = vector.broadcast %21 : vector<1x1x8xf32> to vector<2x16x8xf32>
    %23 = arith.addf %20, %22 : vector<2x16x8xf32>
    %c0_12 = arith.constant 0 : index
    %c0_13 = arith.constant 0 : index
    %c0_14 = arith.constant 0 : index
    %24 = vector.load %arg4[%c0_12, %c0_13, %c0_14] : memref<2x16x8xf32, #tpu.memory_space<vmem>>, vector<2x16x8xf32>
    tpu.vector_store %arg4[%c0_12, %c0_13, %c0_14], %23 {strides = array<i32>} : memref<2x16x8xf32, #tpu.memory_space<vmem>>, vector<2x16x8xf32>,
    %c0_15 = arith.constant 0 : index
    %c0_16 = arith.constant 0 : index
    %25 = vector.load %arg5[%c0_15, %c0_16] : memref<2x8xf32, #tpu.memory_space<vmem>>, vector<2x8xf32>
    tpu.vector_store %arg5[%c0_15, %c0_16], %3 {strides = array<i32>} : memref<2x8xf32, #tpu.memory_space<vmem>>, vector<2x8xf32>,
    %c0_17 = arith.constant 0 : index
    %c0_18 = arith.constant 0 : index
    %26 = vector.load %arg6[%c0_17, %c0_18] : memref<2x8xf32, #tpu.memory_space<vmem>>, vector<2x8xf32>
    tpu.vector_store %arg6[%c0_17, %c0_18], %13 {strides = array<i32>} : memref<2x8xf32, #tpu.memory_space<vmem>>, vector<2x8xf32>,
    return
  }
  func.func @transform_0(%arg0: i32) -> (i32, i32, i32) {
    %c0_i32 = arith.constant 0 : i32
    %c0_i32_0 = arith.constant 0 : i32
    %c0_i32_1 = arith.constant 0 : i32
    return %arg0, %c0_i32, %c0_i32_0 : i32, i32, i32
  }
  func.func @transform_1(%arg0: i32) -> (i32, i32, i32) {
    %c0_i32 = arith.constant 0 : i32
    %c0_i32_0 = arith.constant 0 : i32
    %c0_i32_1 = arith.constant 0 : i32
    %c0_i32_2 = arith.constant 0 : i32
    return %c0_i32, %c0_i32_0, %c0_i32_1 : i32, i32, i32
  }
  func.func @transform_2(%arg0: i32) -> (i32, i32, i32) {
    %c0_i32 = arith.constant 0 : i32
    %c0_i32_0 = arith.constant 0 : i32
    %c0_i32_1 = arith.constant 0 : i32
    %c0_i32_2 = arith.constant 0 : i32
    return %c0_i32, %c0_i32_0, %c0_i32_1 : i32, i32, i32
  }
  func.func @transform_3(%arg0: i32) -> (i32, i32, i32) {
    %c0_i32 = arith.constant 0 : i32
    %c0_i32_0 = arith.constant 0 : i32
    %c0_i32_1 = arith.constant 0 : i32
    return %arg0, %c0_i32, %c0_i32_0 : i32, i32, i32
  }
  func.func @transform_4(%arg0: i32) -> (i32, i32) {
    %c0_i32 = arith.constant 0 : i32
    %c0_i32_0 = arith.constant 0 : i32
    return %arg0, %c0_i32 : i32, i32
  }
  func.func @transform_5(%arg0: i32) -> (i32, i32) {
    %c0_i32 = arith.constant 0 : i32
    %c0_i32_0 = arith.constant 0 : i32
    return %arg0, %c0_i32 : i32, i32
  }
}

</mosaic_0001>

<bundles_post_ra>
// kernel: tpu_custom_call.1
= control target key start
LH: loop header
LB: loop body
LE: loop exit
PB: predicated region body
PF: predicated region fallthrough
CT: control target
= control target key end

     0   :  { %11 = vsyncpa [#allocation3], 0  ;;  %vm23_vm0 = vcmask 64512   ;;  %s347_s0 = inlined_call_operand.vmem [shape: f32[2,16,8], index: 0, kind: input, shape index: {}]   ;;  %s348_s1 = inlined_call_operand.vmem [shape: f32[1,1,8], index: 1, kind: input, shape index: {}]   ;;  %s349_s2 = inlined_call_operand.vmem [shape: f32[1,1,8], index: 2, kind: input, shape index: {}]   ;;  %s350_s3 = inlined_call_operand.vmem [shape: f32[2,16,8], index: 3, kind: output, shape index: {0}]   ;;  %s351_s4 = inlined_call_operand.hbm [shape: f32[2,8], index: 4, kind: output, shape index: {1}]   ;;  %s352_s5 = inlined_call_operand.hbm [shape: f32[2,8], index: 5, kind: output, shape index: {2}]  }
   0x1   :  { %v19_v0 = vld [vmem:[%s347_s0] sm:$0xff]  ;;  %v20_v1 = vld [vmem:[%s347_s0 + $0x8] sm:$0xff]  ;;  %v21_v2 = vld [vmem:[%s347_s0 + $0x10] sm:$0xff] }
   0x2   :  { %v22_v3 = vld [vmem:[%s347_s0 + $0x18] sm:$0xff]  ;;  %v24_v4 = vsel %vm23_vm0, %v19_v0, 0.0  ;;  %v25_v5 = vsel %vm23_vm0, %v20_v1, 0.0  ;;  %v33_v6 = vsel %vm23_vm0, %v21_v2, 0.0 }
   0x3   :  { %v26_v7 = vadd.f32 %v25_v5, %v24_v4  ;;  %v34_v8 = vsel %vm23_vm0, %v22_v3, 0.0 }
   0x4   :  { %12 = vsyncpa [#allocation5], 0  ;;  %v35_v9 = vadd.f32 %v34_v8, %v33_v6  ;;  %s225_s0 = smov [#allocation2]   ;;  %vm123_vm1 = vcmask 1041409   ;;  %vm126_vm2 = vcmask 58368  }
   0x5   :  { %v27_v10 = vrot.slane %v26_v7, 4  ;;  %s141_s26 = sshll.u32 %s225_s0, 4  ;;  %s142_s26 = int_to_ptr.vmem [resolvable:$true] %s141_s26 }
   0x6   :  { %v36_v11 = vrot.slane %v35_v9, 4  ;;  %s177_s27 = scalar_lea.vmem %s142_s26, 32  ;;  %p182_p1 = scmp.lt.s32.totalorder %s142_s26, %s142_s26 }
   0x7   :  { %v28_v12 = vadd.f32 %v27_v10, %v26_v7  ;;  %p178_p0 = scmp.ne.s32.totalorder %s142_s26, %s177_s27  ;;  %p183_p2 = scmp.lt.s32.totalorder %s177_s27, %s177_s27 }
   0x8   :  { %v37_v13 = vadd.f32 %v36_v11, %v35_v9 }
   0x9   :  { %v29_v14 = vrot.slane %v28_v12, 2  ;;  %p184_p3 = por %p183_p2, %p182_p1 }
   0xa   :  { %v38_v15 = vrot.slane %v37_v13, 2 }
   0xb   :  { %v30_v16 = vadd.f32 %v29_v14, %v28_v12  ;;  %p185_p4 = pnand %p184_p3, %p178_p0 }
   0xc   :  { %v39_v17 = vadd.f32 %v38_v15, %v37_v13 }
   0xd   :  { %v31_v18 = vrot.slane %v30_v16, 1 }
   0xe   :  { %v40_v19 = vrot.slane %v39_v17, 1 }
   0xf   :  { %v32_v20 = vadd.f32 %v31_v18, %v30_v16 }
  0x10   :  { %v41_v21 = vadd.f32 %v40_v19, %v39_v17 }
  0x11   :  { %v43_v22 = vmul.f32 0.0625, %v32_v20 }
  0x12   :  { %v44_v23 = vmul.f32 0.0625, %v41_v21 }
  0x13   :  { %v273_v24 = vsub.f32 %v19_v0, %v43_v22  ;;  %v275_v25 = vsub.f32 %v20_v1, %v43_v22 }
  0x14   :  { %v277_v26 = vsub.f32 %v21_v2, %v44_v23  ;;  %v279_v27 = vsub.f32 %v22_v3, %v44_v23  ;;  %v124_v28 = vsel %vm123_vm1, %v44_v23, %v43_v22 }
  0x15   :  { %v49_v29 = vmul.f32 %v273_v24, %v273_v24  ;;  %v50_v30 = vmul.f32 %v275_v25, %v275_v25  ;;  %127 = vst.msk [vmem:[#allocation2] sm:$0x3] %vm126_vm2, %v124_v28 }
  0x16   :  { %v51_v31 = vmul.f32 %v277_v26, %v277_v26  ;;  %v52_v32 = vmul.f32 %v279_v27, %v279_v27 }
  0x17   :  { %188 = shalt.err (!%p185_p4)
}
  0x18   :  { %s189_s30 = scalar_lea.hbm %s351_s4, 32 }
  0x19   :  { %p190_p5 = scmp.ne.s32.totalorder %s351_s4, %s189_s30  ;;  %p193_p6 = scmp.lt.u32.totalorder %s189_s30, %s351_s4 }
  0x1b   :  { %p195_p7 = pnand %p193_p6, %p190_p5 }
  0x1d   :  { %198 = shalt.err (!%p195_p7)
}
  0x1e   :  { %144 = dma.vmem_to_hbm [thread:$0]  %s142_s26, 32, %s351_s4, [#allocation3]   ;;  %v53_v33 = vsel %vm23_vm0, %v49_v29, 0.0  ;;  %v54_v34 = vsel %vm23_vm0, %v50_v30, 0.0  ;;  %v62_v36 = vsel %vm23_vm0, %v51_v31, 0.0  ;;  %v63_v37 = vsel %vm23_vm0, %v52_v32, 0.0 }
  0x1f   :  { %v55_v35 = vadd.f32 %v54_v34, %v53_v33  ;;  %v64_v38 = vadd.f32 %v63_v37, %v62_v36  ;;  %s226_s4 = smov [#allocation4]  }
  0x20   :  { %s151_s12 = sshll.u32 %s226_s4, 4  ;;  %s152_s12 = int_to_ptr.vmem [resolvable:$true] %s151_s12 }
  0x21   :  { %v56_v39 = vrot.slane %v55_v35, 4  ;;  %v65_v40 = vrot.slane %v64_v38, 4  ;;  %s199_s13 = scalar_lea.vmem %s152_s12, 32  ;;  %p204_p9 = scmp.lt.s32.totalorder %s152_s12, %s152_s12 }
  0x22   :  { %p200_p8 = scmp.ne.s32.totalorder %s152_s12, %s199_s13  ;;  %p205_p10 = scmp.lt.s32.totalorder %s199_s13, %s199_s13 }
  0x23   :  { %v57_v41 = vadd.f32 %v56_v39, %v55_v35  ;;  %v66_v42 = vadd.f32 %v65_v40, %v64_v38 }
  0x24   :  { %p206_p11 = por %p205_p10, %p204_p9 }
  0x25   :  { %v58_v43 = vrot.slane %v57_v41, 2  ;;  %v67_v44 = vrot.slane %v66_v42, 2 }
  0x26   :  { %p207_p12 = pnand %p206_p11, %p200_p8 }
  0x27   :  { %v59_v45 = vadd.f32 %v58_v43, %v57_v41  ;;  %v68_v46 = vadd.f32 %v67_v44, %v66_v42 }
  0x29   :  { %v60_v47 = vrot.slane %v59_v45, 1  ;;  %v69_v48 = vrot.slane %v68_v46, 1 }
  0x2b   :  { %v61_v49 = vadd.f32 %v60_v47, %v59_v45  ;;  %v70_v50 = vadd.f32 %v69_v48, %v68_v46 }
  0x2d   :  { %v71_v51 = vmul.f32 0.0625, %v61_v49  ;;  %v72_v52 = vmul.f32 0.0625, %v70_v50 }
  0x2f   :  { %v73_v53 = vadd.f32 1e-05, %v71_v51  ;;  %v74_v54 = vadd.f32 1e-05, %v72_v52 }
  0x31   :  { %169 = vrsqrt.f32 %v73_v53  ;;  %vm77_vm3 = vcmp.eq.f32.partialorder %v73_v53, inf  ;;  %v80_v56 = vand.u32 2147483648, %v73_v53  ;;  %vm79_vm4 = vcmp.eq.f32.partialorder %v73_v53, 0.0 }
  0x32   :  { %171 = vrsqrt.f32 %v74_v54  ;;  %vm84_vm5 = vcmp.eq.f32.partialorder %v74_v54, inf  ;;  %v87_v59 = vand.u32 2147483648, %v74_v54  ;;  %vm86_vm6 = vcmp.eq.f32.partialorder %v74_v54, 0.0 }
  0x3b   :  { %v170_v55 = vpop.eup %169 }
  0x3c   :  { %v172_v57 = vpop.eup %171  ;;  %v76_v58 = vmul.f32 %v170_v55, %v73_v53 }
  0x3d   :  { %v83_v60 = vmul.f32 %v172_v57, %v74_v54 }
  0x3e   :  { %v78_v61 = vsel %vm77_vm3, %v73_v53, %v76_v58 }
  0x3f   :  { %v81_v62 = vsel %vm79_vm4, %v80_v56, %v78_v61  ;;  %v85_v63 = vsel %vm84_vm5, %v74_v54, %v83_v60 }
  0x40   :  { %v88_v0 = vsel %vm86_vm6, %v87_v59, %v85_v63  ;;  %173 = vrcp.f32 %v81_v62 }
  0x41   :  { %175 = vrcp.f32 %v88_v0  ;;  %v130_v1 = vsel %vm123_vm1, %v88_v0, %v81_v62 }
  0x42   :  { %132 = vst.msk [vmem:[#allocation4] sm:$0x3] %vm126_vm2, %v130_v1 }
  0x43   :  { %210 = shalt.err (!%p207_p12)
}
  0x44   :  { %s211_s16 = scalar_lea.hbm %s352_s5, 32 }
  0x45   :  { %p212_p13 = scmp.ne.s32.totalorder %s352_s5, %s211_s16  ;;  %p215_p0 = scmp.lt.u32.totalorder %s211_s16, %s352_s5 }
  0x47   :  { %p217_p1 = pnand %p215_p0, %p212_p13 }
  0x49   :  { %220 = shalt.err (!%p217_p1)
}
  0x4a   :  { %154 = dma.vmem_to_hbm [thread:$0]  %s152_s12, 32, %s352_s5, [#allocation5]   ;;  %v174_v2 = vpop.eup %173  ;;  %v165_v3 = vld [vmem:[%s348_s1] ss:$0 sm:$0xff] }
  0x4b   :  { %v176_v4 = vpop.eup %175  ;;  %v91_v5 = vmul.f32 %v174_v2, %v273_v24  ;;  %v92_v6 = vmul.f32 %v174_v2, %v275_v25  ;;  %v166_v7 = vld [vmem:[%s349_s2] ss:$0 sm:$0xff] }
  0x4c   :  { %v93_v8 = vmul.f32 %v176_v4, %v277_v26  ;;  %v94_v9 = vmul.f32 %v176_v4, %v279_v27 }
  0x4d   :  { %v102_v10 = vmul.f32 %v165_v3, %v91_v5  ;;  %v103_v11 = vmul.f32 %v165_v3, %v92_v6 }
  0x4e   :  { %v104_v12 = vmul.f32 %v165_v3, %v93_v8  ;;  %v105_v13 = vmul.f32 %v165_v3, %v94_v9 }
  0x4f   :  { %v113_v14 = vadd.f32 %v166_v7, %v102_v10  ;;  %v114_v15 = vadd.f32 %v166_v7, %v103_v11 }
  0x50   :  { %v115_v16 = vadd.f32 %v166_v7, %v104_v12  ;;  %v116_v17 = vadd.f32 %v166_v7, %v105_v13 }
  0x51   :  { %117 = vst.msk [vmem:[%s350_s3] sm:$0xff] %vm23_vm0, %v113_v14  ;;  %118 = vst.msk [vmem:[%s350_s3 + $0x8] sm:$0xff] %vm23_vm0, %v114_v15 }
  0x52   :  { %119 = vst.msk [vmem:[%s350_s3 + $0x10] sm:$0xff] %vm23_vm0, %v115_v16  ;;  %120 = vst.msk [vmem:[%s350_s3 + $0x18] sm:$0xff] %vm23_vm0, %v116_v17 }
  0x53   :  { %221 = dma.done.wait [#allocation3], 32  }
  0x54   :  { %222 = vsyncadd [#allocation3], 4294967264 }
  0x55   :  { %223 = dma.done.wait [#allocation5], 32  }
  0x56   :  { %224 = vsyncadd [#allocation5], 4294967264 }
  0x57   :  { %163 = vsyncpa [#allocation3], 1 }
  0x58   :  { %164 = vsyncpa [#allocation5], 1 }

</bundles_post_ra>
